<compile_context>
chip_gen: v6e
topology: v6e:2x2x1
jax: 0.10.0
libtpu: 0.0.40
codegen_flags: <defaults>
</compile_context>

<pallas_src>
import functools

import jax
import jax.numpy as jnp
from jax.experimental import pallas as pl
from jax.experimental.pallas import tpu as pltpu


def _round_up(x: int, m: int) -> int:
    return ((x + m - 1) // m) * m


# ---------------------------------------------------------------------------
# Kernel body
# ---------------------------------------------------------------------------
def fused_mlp_kernel(x_ref, wgu_ref, wd_ref, o_ref, acc_ref, *, ti):
    """One grid step: (token tile i, intermediate chunk j).

    gu   = x @ Wgu[:, j]          (single MXU pass, N = 2*ti: [gate | up])
    h    = silu(gu[:, :ti]) * gu[:, ti:]
    acc += h @ Wd[j, :]           (accumulated across j; written on last j)
    """
    j = pl.program_id(1)

    @pl.when(j == 0)
    def _():
        acc_ref[...] = jnp.zeros_like(acc_ref)

    x = x_ref[...]
    # Fused gate+up projection: one (tm, H) x (H, 2*ti) MXU pass, f32 accum.
    gu = jnp.dot(x, wgu_ref[...], preferred_element_type=jnp.float32)
    g = gu[:, :ti]          # static, 128-aligned slices of the MXU result
    u = gu[:, ti:]

    # SwiGLU: silu(g) * u.  sigmoid goes to the EUP slot, multiplies to VALU —
    # free filler once the MXU is the binding unit at these tile sizes.
    h = (g * jax.nn.sigmoid(g)) * u

    # Down-projection partial sum for this chunk.  h is quantized to the
    # weight dtype (bf16) before the MXU — the standard half-precision
    # production path (matches the fp16 torch module; intentionally not
    # bit-identical to an all-f32 reference).
    acc_ref[...] += jnp.dot(h.astype(wd_ref.dtype), wd_ref[...],
                            preferred_element_type=jnp.float32)

    @pl.when(j == pl.num_programs(1) - 1)
    def _():
        o_ref[...] = acc_ref[...].astype(o_ref.dtype)


# ---------------------------------------------------------------------------
# Device-aware tile selection
# ---------------------------------------------------------------------------
def _vmem_capacity_bytes() -> int:
    try:
        return int(pltpu.get_tpu_info().vmem_capacity_bytes)
    except Exception:
        return 64 << 20  # conservative fallback (v7x per-TensorCore VMEM)


def _vmem_footprint_bytes(tm, ti, H, itemsize):
    wgu = 2 * H * (2 * ti) * itemsize   # fused gate|up chunk, double-buffered
    wd = 2 * ti * H * itemsize          # down chunk, double-buffered
    x_out = 2 * 2 * tm * H * itemsize   # x tile + out tile, double-buffered
    acc = tm * H * 4                    # f32 accumulator scratch
    return wgu + wd + x_out + acc


def _ti_candidates(I, ti_target):
    ti_cap = min(ti_target, _round_up(I, 128))
    cands = list(range(ti_cap, 127, -128))
    I128 = _round_up(I, 128)
    exact = [t for t in cands if I128 % t == 0]
    if exact and 2 * exact[0] >= ti_cap:
        # A near-target chunk size divides I exactly: prefer it (no padded
        # columns -> no wasted MXU work), fall back to padded sizes only then.
        return exact + [t for t in cands if I128 % t != 0]
    return cands


def select_tiles(S, H, I, itemsize, vmem_capacity=None):
    """Pick (tm, ti, vmem_limit_bytes) for the current device & problem size."""
    if vmem_capacity is None:
        vmem_capacity = _vmem_capacity_bytes()
    budget = vmem_capacity - (6 << 20)       # Mosaic internal scratch + headroom

    big_vmem = vmem_capacity >= (96 << 20)   # v5e/v6e (128 MiB) vs v7x (64 MiB)
    tm_target = 768 if big_vmem else 512     # weight-reuse (roofline) knob
    ti_target = 1024 if big_vmem else 512    # accumulator-RMW-traffic knob

    sr = _round_up(max(S, 1), 16)            # bf16 packs 16 rows per sublane group
    tm_cands = [t for t in range(tm_target, 127, -128) if t <= sr] or [sr]
    ti_cands = _ti_candidates(I, ti_target)

    for tm in tm_cands:                      # larger tm first: intensity dominates
        for ti in ti_cands:
            fp = _vmem_footprint_bytes(tm, ti, H, itemsize)
            if fp <= budget:
                vmem_limit = max(min(fp + (8 << 20), vmem_capacity - (2 << 20)),
                                 16 << 20)
                return tm, ti, int(vmem_limit)

    tm, ti = tm_cands[-1], 128               # last-resort fallback
    fp = _vmem_footprint_bytes(tm, ti, H, itemsize)
    return tm, ti, int(min(fp + (8 << 20), vmem_capacity - (2 << 20)))


# ---------------------------------------------------------------------------
# One-time weight preparation (do NOT call per forward)
# ---------------------------------------------------------------------------
def pack_weights(w_gate, w_up, w_down, ti):
    """Pad the intermediate dim to a multiple of ti and interleave gate/up
    columns per ti-chunk so each grid step reads a single (H, 2*ti) block.

    Zero padding is exact: silu(0)*0 = 0 and padded w_down rows are zero.
    Returns (w_gu [H, 2*Ip], w_down [Ip, H]).
    """
    H, I = w_gate.shape
    Ip = _round_up(I, ti)
    if Ip != I:
        w_gate = jnp.pad(w_gate, ((0, 0), (0, Ip - I)))
        w_up = jnp.pad(w_up, ((0, 0), (0, Ip - I)))
        w_down = jnp.pad(w_down, ((0, Ip - I), (0, 0)))
    n = Ip // ti
    w_gu = jnp.stack(
        [w_gate.reshape(H, n, ti), w_up.reshape(H, n, ti)], axis=2
    ).reshape(H, 2 * Ip)
    return w_gu, w_down


# ---------------------------------------------------------------------------
# Pallas call wrapper (packed weights, static tiles)
# ---------------------------------------------------------------------------
@functools.partial(jax.jit, static_argnames=("tm", "ti", "vmem_limit"))
def fused_mlp_packed(x, w_gu, w_down, *, tm, ti, vmem_limit):
    """x: [S, H]; w_gu: [H, 2*Ip] (ti-interleaved gate|up); w_down: [Ip, H]."""
    S, H = x.shape
    Ip = w_down.shape[0]
    assert Ip % ti == 0 and w_gu.shape == (H, 2 * Ip)
    itemsize = jnp.dtype(x.dtype).itemsize

    # Only the (cheap) token dim is padded per call; weights were padded once.
    Sp = _round_up(S, tm)
    if Sp != S:
        x = jnp.pad(x, ((0, Sp - S), (0, 0)))

    grid = (Sp // tm, Ip // ti)

    cost = pl.CostEstimate(
        flops=6 * Sp * H * Ip,                   # gate + up + down matmuls
        transcendentals=Sp * Ip,                 # sigmoid in silu
        bytes_accessed=(2 * Sp * H               # x read + out write
                        + grid[0] * 3 * H * Ip   # weights re-streamed per token tile
                        ) * itemsize,
    )

    kernel = functools.partial(fused_mlp_kernel, ti=ti)

    out = pl.pallas_call(
        kernel,
        out_shape=jax.ShapeDtypeStruct((Sp, H), x.dtype),
        grid_spec=pltpu.PrefetchScalarGridSpec(
            num_scalar_prefetch=0,
            grid=grid,
            in_specs=[
                pl.BlockSpec((tm, H), lambda i, j: (i, 0)),      # x tile (resident over j)
                pl.BlockSpec((H, 2 * ti), lambda i, j: (0, j)),  # fused gate|up chunk
                pl.BlockSpec((ti, H), lambda i, j: (j, 0)),      # down chunk
            ],
            out_specs=pl.BlockSpec((tm, H), lambda i, j: (i, 0)),
            scratch_shapes=[pltpu.VMEM((tm, H), jnp.float32)],
        ),
        compiler_params=pltpu.CompilerParams(
            # 'parallel' on i engages the 2nd TensorCore on v7x (no-op on
            # single-core v5e/v6e); j is the sequential reduction axis.
            dimension_semantics=("parallel", "arbitrary"),
            vmem_limit_bytes=int(vmem_limit)),
        cost_estimate=cost,
    )(x, w_gu, w_down)

    return out[:S] if Sp != S else out


def fused_mlp(x, w_gate, w_up, w_down):
    """Convenience wrapper.  Packs weights per call — for repeated forwards,
    call select_tiles + pack_weights once and reuse fused_mlp_packed."""
    S, H = x.shape
    I = w_gate.shape[1]
    tm, ti, vmem_limit = select_tiles(S, H, I, jnp.dtype(x.dtype).itemsize)
    w_gu, w_down_p = pack_weights(w_gate, w_up, w_down, ti)
    return fused_mlp_packed(x, w_gu, w_down_p, tm=tm, ti=ti,
                            vmem_limit=vmem_limit)


def fused_mlp_ref(x, w_gate, w_up, w_down):
    xf = x.astype(jnp.float32)
    g = xf @ w_gate.astype(jnp.float32)
    u = xf @ w_up.astype(jnp.float32)
    h = (g * jax.nn.sigmoid(g)) * u
    return (h @ w_down.astype(jnp.float32)).astype(x.dtype)


if __name__ == "__main__":
    # Small Qwen2-like config: hidden=128, intermediate=512, batch=2, seq=8
    hidden_size = 128
    intermediate_size = 512
    batch, seq = 2, 8

    key = jax.random.PRNGKey(0)
    kx, kg, ku, kd = jax.random.split(key, 4)

    dtype = jnp.bfloat16
    x = jax.random.normal(kx, (batch * seq, hidden_size), jnp.float32).astype(dtype)
    # Deterministic synthetic weights (stored [in, out] for x @ W).
    w_gate = (jax.random.normal(kg, (hidden_size, intermediate_size), jnp.float32)
              * (1.0 / hidden_size ** 0.5)).astype(dtype)
    w_up = (jax.random.normal(ku, (hidden_size, intermediate_size), jnp.float32)
            * (1.0 / hidden_size ** 0.5)).astype(dtype)
    w_down = (jax.random.normal(kd, (intermediate_size, hidden_size), jnp.float32)
              * (1.0 / intermediate_size ** 0.5)).astype(dtype)

    # Prepare-once path (what a real model loop should do).
    S, H = x.shape
    tm, ti, vmem_limit = select_tiles(S, H, intermediate_size,
                                      jnp.dtype(dtype).itemsize)
    w_gu, w_down_p = pack_weights(w_gate, w_up, w_down, ti)
    w_gu = jax.block_until_ready(w_gu)
    w_down_p = jax.block_until_ready(w_down_p)

    out = fused_mlp_packed(x, w_gu, w_down_p, tm=tm, ti=ti,
                           vmem_limit=vmem_limit)
    out = jax.block_until_ready(out)

    # Sanity check against pure-JAX reference (bf16 path -> loose tolerance).
    ref = fused_mlp_ref(x, w_gate, w_up, w_down)
    assert out.shape == (batch * seq, hidden_size)
    assert jnp.allclose(out.astype(jnp.float32), ref.astype(jnp.float32),
                        atol=2.5e-2, rtol=2.5e-2), "mismatch vs reference"

    print("KERNEL_OK")
</pallas_src>

<mosaic_0001>
module attributes {stable_mosaic.version = 11 : i64} {
  func.func @fused_mlp_kernel(%arg0: i32, %arg1: i32, %arg2: memref<16x128xbf16, #tpu.memory_space<vmem>>, %arg3: memref<128x1024xbf16, #tpu.memory_space<vmem>>, %arg4: memref<512x128xbf16, #tpu.memory_space<vmem>>, %arg5: memref<16x128xbf16, #tpu.memory_space<vmem>>, %arg6: memref<16x128xf32, #tpu.memory_space<vmem>>) attributes {dimension_semantics = [#tpu.dimension_semantics<parallel>, #tpu.dimension_semantics<arbitrary>], iteration_bounds = array<i64: 1, 1>, scalar_prefetch = 0 : i64, scratch_operands = 1 : i64, tpu.core_type = #tpu.core_type<tc>, window_params = [{transform_indices = @transform_0, window_bounds = array<i64: 16, 128>}, {transform_indices = @transform_1, window_bounds = array<i64: 128, 1024>}, {transform_indices = @transform_2, window_bounds = array<i64: 512, 128>}, {transform_indices = @transform_3, window_bounds = array<i64: 16, 128>}]} {
    %c0_i32 = arith.constant 0 : i32
    %0 = arith.cmpi eq, %arg1, %c0_i32 : i32
    %1 = arith.extui %0 : i1 to i32
    %c0_i32_0 = arith.constant 0 : i32
    %2 = arith.cmpi ne, %1, %c0_i32_0 : i32
    scf.if %2 {
      %cst_14 = arith.constant 0.000000e+00 : f32
      %24 = vector.broadcast %cst_14 : f32 to vector<16x128xf32>
      %c0_15 = arith.constant 0 : index
      %c0_16 = arith.constant 0 : index
      %25 = vector.load %arg6[%c0_15, %c0_16] : memref<16x128xf32, #tpu.memory_space<vmem>>, vector<16x128xf32>
      tpu.vector_store %arg6[%c0_15, %c0_16], %24 {strides = array<i32>} : memref<16x128xf32, #tpu.memory_space<vmem>>, vector<16x128xf32>,
    } else {
    }
    %c0 = arith.constant 0 : index
    %c0_1 = arith.constant 0 : index
    %3 = vector.load %arg2[%c0, %c0_1] : memref<16x128xbf16, #tpu.memory_space<vmem>>, vector<16x128xbf16>
    %c0_2 = arith.constant 0 : index
    %c0_3 = arith.constant 0 : index
    %4 = vector.load %arg3[%c0_2, %c0_3] : memref<128x1024xbf16, #tpu.memory_space<vmem>>, vector<128x1024xbf16>
    %cst = arith.constant dense<0.000000e+00> : vector<16x1024xf32>
    %5 = tpu.matmul %3, %4, %cst {dimension_numbers = #tpu.dot_dimension_numbers<[1], [0], [0], [1], [0, 0, 1, 1], [], []>} : vector<16x128xbf16>, vector<128x1024xbf16>, vector<16x1024xf32> -> vector<16x1024xf32>
    %6 = vector.extract_strided_slice %5 {offsets = [0, 0], sizes = [16, 512], strides = [1, 1]} : vector<16x1024xf32> to vector<16x512xf32>
    %7 = vector.extract_strided_slice %5 {offsets = [0, 512], sizes = [16, 512], strides = [1, 1]} : vector<16x1024xf32> to vector<16x512xf32>
    %8 = arith.negf %6 : vector<16x512xf32>
    %9 = math.exp %8 : vector<16x512xf32>
    %cst_4 = arith.constant 1.000000e+00 : f32
    %10 = vector.broadcast %cst_4 : f32 to vector<16x512xf32>
    %11 = arith.addf %10, %9 : vector<16x512xf32>
    %12 = arith.divf %10, %11 : vector<16x512xf32>
    %13 = arith.mulf %6, %12 : vector<16x512xf32>
    %14 = arith.mulf %13, %7 : vector<16x512xf32>
    %c0_5 = arith.constant 0 : index
    %c0_6 = arith.constant 0 : index
    %15 = vector.load %arg6[%c0_5, %c0_6] : memref<16x128xf32, #tpu.memory_space<vmem>>, vector<16x128xf32>
    %16 = arith.truncf %14 : vector<16x512xf32> to vector<16x512xbf16>
    %c0_7 = arith.constant 0 : index
    %c0_8 = arith.constant 0 : index
    %17 = vector.load %arg4[%c0_7, %c0_8] : memref<512x128xbf16, #tpu.memory_space<vmem>>, vector<512x128xbf16>
    %cst_9 = arith.constant dense<0.000000e+00> : vector<16x128xf32>
    %18 = tpu.matmul %16, %17, %cst_9 {dimension_numbers = #tpu.dot_dimension_numbers<[1], [0], [0], [1], [0, 0, 1, 1], [], []>} : vector<16x512xbf16>, vector<512x128xbf16>, vector<16x128xf32> -> vector<16x128xf32>
    %19 = arith.addf %15, %18 : vector<16x128xf32>
    %c0_10 = arith.constant 0 : index
    %c0_11 = arith.constant 0 : index
    %20 = vector.load %arg6[%c0_10, %c0_11] : memref<16x128xf32, #tpu.memory_space<vmem>>, vector<16x128xf32>
    tpu.vector_store %arg6[%c0_10, %c0_11], %19 {strides = array<i32>} : memref<16x128xf32, #tpu.memory_space<vmem>>, vector<16x128xf32>,
    %c0_i32_12 = arith.constant 0 : i32
    %21 = arith.cmpi eq, %arg1, %c0_i32_12 : i32
    %22 = arith.extui %21 : i1 to i32
    %c0_i32_13 = arith.constant 0 : i32
    %23 = arith.cmpi ne, %22, %c0_i32_13 : i32
    scf.if %23 {
      %c0_14 = arith.constant 0 : index
      %c0_15 = arith.constant 0 : index
      %24 = vector.load %arg6[%c0_14, %c0_15] : memref<16x128xf32, #tpu.memory_space<vmem>>, vector<16x128xf32>
      %25 = arith.truncf %24 : vector<16x128xf32> to vector<16x128xbf16>
      %c0_16 = arith.constant 0 : index
      %c0_17 = arith.constant 0 : index
      %26 = vector.load %arg5[%c0_16, %c0_17] : memref<16x128xbf16, #tpu.memory_space<vmem>>, vector<16x128xbf16>
      tpu.vector_store %arg5[%c0_16, %c0_17], %25 {strides = array<i32>} : memref<16x128xbf16, #tpu.memory_space<vmem>>, vector<16x128xbf16>,
    } else {
    }
    return
  }
  func.func @transform_0(%arg0: i32, %arg1: i32) -> (i32, i32) {
    %c0_i32 = arith.constant 0 : i32
    %c0_i32_0 = arith.constant 0 : i32
    return %arg0, %c0_i32 : i32, i32
  }
  func.func @transform_1(%arg0: i32, %arg1: i32) -> (i32, i32) {
    %c0_i32 = arith.constant 0 : i32
    %c0_i32_0 = arith.constant 0 : i32
    return %c0_i32, %arg1 : i32, i32
  }
  func.func @transform_2(%arg0: i32, %arg1: i32) -> (i32, i32) {
    %c0_i32 = arith.constant 0 : i32
    %c0_i32_0 = arith.constant 0 : i32
    return %arg1, %c0_i32 : i32, i32
  }
  func.func @transform_3(%arg0: i32, %arg1: i32) -> (i32, i32) {
    %c0_i32 = arith.constant 0 : i32
    %c0_i32_0 = arith.constant 0 : i32
    return %arg0, %c0_i32 : i32, i32
  }
}

</mosaic_0001>

<bundles_post_ra>
// kernel: fused_mlp_packed.1
= control target key start
LH: loop header
LB: loop body
LE: loop exit
PB: predicated region body
PF: predicated region fallthrough
CT: control target
= control target key end

     0   :  { %8 = vsyncpa [#allocation4], 0  ;;  %s1458_s0 = inlined_call_operand.hbm [shape: bf16[16,128], index: 0, kind: input, shape index: {}]   ;;  %s1459_s1 = inlined_call_operand.hbm [shape: bf16[128,1024], index: 1, kind: input, shape index: {}]   ;;  %s1460_s2 = inlined_call_operand.hbm [shape: bf16[512,128], index: 2, kind: input, shape index: {}]   ;;  %s1461_s3 = inlined_call_operand.hbm [shape: bf16[16,128], index: 3, kind: output, shape index: {}]  }
   0x1   :  { %9 = vsyncpa [#allocation7], 0 }
   0x2   :  { %10 = vsyncpa [#allocation5], 0  ;;  %s1390_s12 = smov [#allocation6]  }
   0x3   :  { %s28_s13 = sshll.u32 %s1390_s12, 4  ;;  %s29_s13 = int_to_ptr.vmem [resolvable:$true] %s28_s13 }
   0x4   :  { %s1312_s14 = scalar_lea.vmem %s29_s13, 8192  ;;  %p1317_p1 = scmp.lt.s32.totalorder %s29_s13, %s29_s13 }
   0x5   :  { %p1313_p0 = scmp.ne.s32.totalorder %s29_s13, %s1312_s14  ;;  %p1318_p2 = scmp.lt.s32.totalorder %s1312_s14, %s1312_s14 }
   0x7   :  { %p1319_p3 = por %p1318_p2, %p1317_p1 }
   0x9   :  { %p1320_p4 = pnand %p1319_p3, %p1313_p0 }
   0xb   :  { %1323 = shalt.err (!%p1320_p4)
}
   0xc   :  { %s1391_s15 = smov 512   ;;  %s1392_s16 = smov 32  }
   0xd   :  { %34 = dma.hbm_to_vmem [thread:$0]  %s1459_s1, 8192, %s29_s13, [#allocation7], %s1391_s15, %s1391_s15, %s1392_s16  }
   0xe   :  { %s1393_s19 = smov [#allocation3]  }
   0xf   :  { %s16_s20 = sshll.u32 %s1393_s19, 4  ;;  %s17_s20 = int_to_ptr.vmem [resolvable:$true] %s16_s20 }
  0x10   :  { %s1332_s21 = scalar_lea.vmem %s17_s20, 128  ;;  %p1337_p6 = scmp.lt.s32.totalorder %s17_s20, %s17_s20 }
  0x11   :  { %p1333_p5 = scmp.ne.s32.totalorder %s17_s20, %s1332_s21  ;;  %p1338_p7 = scmp.lt.s32.totalorder %s1332_s21, %s1332_s21 }
  0x13   :  { %p1339_p8 = por %p1338_p7, %p1337_p6 }
  0x15   :  { %p1340_p9 = pnand %p1339_p8, %p1333_p5 }
  0x17   :  { %1343 = shalt.err (!%p1340_p9)
}
  0x18   :  { %s1394_s22 = smov 64   ;;  %s1395_s23 = smov 4  }
  0x19   :  { %22 = dma.hbm_to_vmem [thread:$0]  %s1458_s0, 128, %s17_s20, [#allocation4], %s1394_s22, %s1394_s22, %s1395_s23  }
  0x1a   :  { %s1396_s1 = smov [#allocation8]  }
  0x1b   :  { %s40_s26 = sshll.u32 %s1396_s1, 4  ;;  %s41_s26 = int_to_ptr.vmem [resolvable:$true] %s40_s26 }
  0x1c   :  { %s1352_s27 = scalar_lea.vmem %s41_s26, 4096  ;;  %p1357_p11 = scmp.lt.s32.totalorder %s41_s26, %s41_s26 }
  0x1d   :  { %p1353_p10 = scmp.ne.s32.totalorder %s41_s26, %s1352_s27  ;;  %p1358_p12 = scmp.lt.s32.totalorder %s1352_s27, %s1352_s27 }
  0x1f   :  { %p1359_p13 = por %p1358_p12, %p1357_p11 }
  0x21   :  { %p1360_p0 = pnand %p1359_p13, %p1353_p10 }
  0x23   :  { %1363 = shalt.err (!%p1360_p0)
}
  0x24   :  { %46 = dma.hbm_to_vmem [thread:$0]  %s1460_s2, 4096, %s41_s26, [#allocation7], %s1394_s22, %s1394_s22, %s1395_s23  }
  0x25   :  { %1384 = dma.done.wait [#allocation4], 128  }
  0x26   :  { %1385 = vsyncadd [#allocation4], 4294967168 }
  0x27   :  { %1386 = dma.done.wait [#allocation7], 12288  }
  0x28   :  { %1387 = vsyncadd [#allocation7], 4294955008  ;;  %v1397_v0 = vmov 0   ;;  %v121_v1 = vld [vmem:[#allocation6 + $0x1c0] sm:$0xff]  ;;  %v122_v3 = vld [vmem:[#allocation6 + $0x1c8] sm:$0xff]  ;;  %s1398_s0 = smov [#allocation9]  }
  0x29   :  { %487 = vmatprep.mubr.bf16.mxu0 %v1397_v0  ;;  %530 = vmatprep.mubr.bf16.mxu1 %v1397_v0  ;;  %v125_v2 = vld [vmem:[#allocation6 + $0x1e0] sm:$0xff]  ;;  %v126_v5 = vld [vmem:[#allocation6 + $0x1e8] sm:$0xff]  ;;  %v123_v60 = vld [vmem:[#allocation6 + $0x1d0] sm:$0xff]  ;;  %s1059_s2 = sshll.u32 %s1398_s0, 4  ;;  %s1060_s2 = int_to_ptr.vmem [resolvable:$true] %s1059_s2 }
  0x2a   :  { %v1130_v4 = vcombine.high %v121_v1, %v125_v2  ;;  %v1129_v6 = vcombine.low %v121_v1, %v125_v2  ;;  %v113_v7 = vld [vmem:[#allocation6 + $0x180] sm:$0xff]  ;;  %v1132_v9 = vcombine.high %v122_v3, %v126_v5  ;;  %v1131_v10 = vcombine.low %v122_v3, %v126_v5  ;;  %v114_v12 = vld [vmem:[#allocation6 + $0x188] sm:$0xff]  ;;  %v127_v61 = vld [vmem:[#allocation6 + $0x1f0] sm:$0xff]  ;;  %s1364_s30 = scalar_lea.vmem %s1060_s2, 128  ;;  %p1369_p2 = scmp.lt.s32.totalorder %s1060_s2, %s1060_s2 }
  0x2b   :  { %v117_v8 = vld [vmem:[#allocation6 + $0x1a0] sm:$0xff]  ;;  %v118_v13 = vld [vmem:[#allocation6 + $0x1a8] sm:$0xff]  ;;  %v124_v1 = vld [vmem:[#allocation6 + $0x1d8] sm:$0xff]  ;;  %p1365_p1 = scmp.ne.s32.totalorder %s1060_s2, %s1364_s30  ;;  %p1370_p3 = scmp.lt.s32.totalorder %s1364_s30, %s1364_s30 }
  0x2c   :  { %v1122_v11 = vcombine.high %v113_v7, %v117_v8  ;;  %v105_v14 = vld [vmem:[#allocation6 + $0x140] sm:$0xff]  ;;  %455 = vmatprep.subr.bf16.mxu0 %v1130_v4  ;;  %v1124_v15 = vcombine.high %v114_v12, %v118_v13  ;;  %v106_v17 = vld [vmem:[#allocation6 + $0x148] sm:$0xff]  ;;  %498 = vmatprep.subr.bf16.mxu1 %v1132_v9  ;;  %v1121_v19 = vcombine.low %v113_v7, %v117_v8  ;;  %v128_v2 = vld [vmem:[#allocation6 + $0x1f8] sm:$0xff] }
  0x2d   :  { %v109_v16 = vld [vmem:[#allocation6 + $0x160] sm:$0xff]  ;;  %v110_v18 = vld [vmem:[#allocation6 + $0x168] sm:$0xff]  ;;  %456 = vmatpush1.bf16.msra.mxu0 %v1129_v6  ;;  %499 = vmatpush1.bf16.msra.mxu1 %v1131_v10  ;;  %v1123_v20 = vcombine.low %v114_v12, %v118_v13  ;;  %v115_v5 = vld [vmem:[#allocation6 + $0x190] sm:$0xff]  ;;  %v1134_v9 = vcombine.high %v123_v60, %v127_v61  ;;  %v1136_v12 = vcombine.high %v124_v1, %v128_v2  ;;  %p1371_p4 = por %p1370_p3, %p1369_p2 }
  0x2e   :  { %457 = vmatprep.subr.bf16.mxu0 %v1122_v11  ;;  %v1114_v21 = vcombine.high %v105_v14, %v109_v16  ;;  %500 = vmatprep.subr.bf16.mxu1 %v1124_v15  ;;  %v1116_v22 = vcombine.high %v106_v17, %v110_v18  ;;  %v97_v23 = vld [vmem:[#allocation6 + $0x100] sm:$0xff]  ;;  %v98_v25 = vld [vmem:[#allocation6 + $0x108] sm:$0xff]  ;;  %v1113_v27 = vcombine.low %v105_v14, %v109_v16  ;;  %v119_v6 = vld [vmem:[#allocation6 + $0x1b0] sm:$0xff] }
  0x2f   :  { %v101_v24 = vld [vmem:[#allocation6 + $0x120] sm:$0xff]  ;;  %v102_v26 = vld [vmem:[#allocation6 + $0x128] sm:$0xff]  ;;  %v1115_v28 = vcombine.low %v106_v17, %v110_v18  ;;  %v1436_v8 = vld [vmem:[#allocation3] sm:$0xff]   ;;  %v1133_v13 = vcombine.low %v123_v60, %v127_v61  ;;  %v1135_v16 = vcombine.low %v124_v1, %v128_v2  ;;  %v1126_v17 = vcombine.high %v115_v5, %v119_v6  ;;  %p1372_p5 = pnand %p1371_p4, %p1365_p1 }
  0x30   :  { %v1106_v29 = vcombine.high %v97_v23, %v101_v24  ;;  %v1108_v30 = vcombine.high %v98_v25, %v102_v26  ;;  %v89_v31 = vld [vmem:[#allocation6 + $0xc0] sm:$0xff]  ;;  %v90_v33 = vld [vmem:[#allocation6 + $0xc8] sm:$0xff]  ;;  %v1105_v35 = vcombine.low %v97_v23, %v101_v24  ;;  %v1107_v36 = vcombine.low %v98_v25, %v102_v26  ;;  %v116_v10 = vld [vmem:[#allocation6 + $0x198] sm:$0xff] }
  0x31   :  { %458 = vmatpush1.bf16.msra.mxu0 %v1121_v19  ;;  %501 = vmatpush1.bf16.msra.mxu1 %v1123_v20  ;;  %v93_v32 = vld [vmem:[#allocation6 + $0xe0] sm:$0xff]  ;;  %v94_v34 = vld [vmem:[#allocation6 + $0xe8] sm:$0xff]  ;;  %v120_v11 = vld [vmem:[#allocation6 + $0x1b8] sm:$0xff] }
  0x32   :  { %459 = vmatprep.subr.bf16.mxu0 %v1114_v21  ;;  %502 = vmatprep.subr.bf16.mxu1 %v1116_v22  ;;  %v1098_v37 = vcombine.high %v89_v31, %v93_v32  ;;  %v1100_v38 = vcombine.high %v90_v33, %v94_v34  ;;  %v81_v39 = vld [vmem:[#allocation6 + $0x80] sm:$0xff]  ;;  %v82_v41 = vld [vmem:[#allocation6 + $0x88] sm:$0xff]  ;;  %v1097_v43 = vcombine.low %v89_v31, %v93_v32  ;;  %v107_v14 = vld [vmem:[#allocation6 + $0x150] sm:$0xff] }
  0x33   :  { %v85_v40 = vld [vmem:[#allocation6 + $0xa0] sm:$0xff]  ;;  %v86_v42 = vld [vmem:[#allocation6 + $0xa8] sm:$0xff]  ;;  %v1099_v44 = vcombine.low %v90_v33, %v94_v34  ;;  %v111_v15 = vld [vmem:[#allocation6 + $0x170] sm:$0xff]  ;;  %v1128_v20 = vcombine.high %v116_v10, %v120_v11  ;;  %v1125_v21 = vcombine.low %v115_v5, %v119_v6  ;;  %v1127_v24 = vcombine.low %v116_v10, %v120_v11 }
  0x34   :  { %v1090_v45 = vcombine.high %v81_v39, %v85_v40  ;;  %v1092_v46 = vcombine.high %v82_v41, %v86_v42  ;;  %v73_v47 = vld [vmem:[#allocation6 + $0x40] sm:$0xff]  ;;  %v74_v49 = vld [vmem:[#allocation6 + $0x48] sm:$0xff]  ;;  %v1089_v51 = vcombine.low %v81_v39, %v85_v40  ;;  %v1091_v52 = vcombine.low %v82_v41, %v86_v42  ;;  %v108_v18 = vld [vmem:[#allocation6 + $0x158] sm:$0xff] }
  0x35   :  { %460 = vmatpush1.bf16.msra.mxu0 %v1113_v27  ;;  %503 = vmatpush1.bf16.msra.mxu1 %v1115_v28  ;;  %v77_v48 = vld [vmem:[#allocation6 + $0x60] sm:$0xff]  ;;  %v78_v50 = vld [vmem:[#allocation6 + $0x68] sm:$0xff]  ;;  %v112_v19 = vld [vmem:[#allocation6 + $0x178] sm:$0xff]  ;;  %v1118_v25 = vcombine.high %v107_v14, %v111_v15 }
  0x36   :  { %461 = vmatprep.subr.bf16.mxu0 %v1106_v29  ;;  %504 = vmatprep.subr.bf16.mxu1 %v1108_v30  ;;  %v1082_v53 = vcombine.high %v73_v47, %v77_v48  ;;  %v65_v54 = vld [vmem:[#allocation6] sm:$0xff]  ;;  %v66_v56 = vld [vmem:[#allocation6 + $0x8] sm:$0xff]  ;;  %v1084_v57 = vcombine.high %v74_v49, %v78_v50  ;;  %v1081_v59 = vcombine.low %v73_v47, %v77_v48  ;;  %v99_v22 = vld [vmem:[#allocation6 + $0x110] sm:$0xff] }
  0x37   :  { %v69_v55 = vld [vmem:[#allocation6 + $0x20] sm:$0xff]  ;;  %v70_v58 = vld [vmem:[#allocation6 + $0x28] sm:$0xff]  ;;  %v1083_v62 = vcombine.low %v74_v49, %v78_v50  ;;  %v103_v23 = vld [vmem:[#allocation6 + $0x130] sm:$0xff]  ;;  %v1120_v28 = vcombine.high %v108_v18, %v112_v19  ;;  %v1117_v29 = vcombine.low %v107_v14, %v111_v15  ;;  %v1119_v32 = vcombine.low %v108_v18, %v112_v19 }
  0x38   :  { %v1074_v63 = vcombine.high %v65_v54, %v69_v55  ;;  %v1076_v3 = vcombine.high %v66_v56, %v70_v58  ;;  %v1073_v4 = vcombine.low %v65_v54, %v69_v55  ;;  %v1075_v7 = vcombine.low %v66_v56, %v70_v58  ;;  %v100_v26 = vld [vmem:[#allocation6 + $0x118] sm:$0xff]  ;;  %v91_v30 = vld [vmem:[#allocation6 + $0xd0] sm:$0xff]  ;;  %v1250_v14 = vld [vmem:[#allocation8 + $0x28] sm:$0xff]  }
  0x39   :  { %462 = vmatpush1.bf16.msra.mxu0 %v1105_v35  ;;  %505 = vmatpush1.bf16.msra.mxu1 %v1107_v36  ;;  %v104_v27 = vld [vmem:[#allocation6 + $0x138] sm:$0xff]  ;;  %v95_v31 = vld [vmem:[#allocation6 + $0xf0] sm:$0xff]  ;;  %v1110_v33 = vcombine.high %v99_v22, %v103_v23  ;;  %v1252_v15 = vld [vmem:[#allocation8 + $0x60] sm:$0xff]  }
  0x3a   :  { %463 = vmatprep.subr.bf16.mxu0 %v1098_v37  ;;  %506 = vmatprep.subr.bf16.mxu1 %v1100_v38  ;;  %v92_v34 = vld [vmem:[#allocation6 + $0xd8] sm:$0xff]  ;;  %v1112_v35 = vcombine.high %v100_v26, %v104_v27  ;;  %v1109_v37 = vcombine.low %v99_v22, %v103_v23  ;;  %v1111_v38 = vcombine.low %v100_v26, %v104_v27  ;;  %v83_v40 = vld [vmem:[#allocation6 + $0x90] sm:$0xff]  ;;  %v1255_v18 = vld [vmem:[#allocation8 + $0xa0] sm:$0xff]  }
  0x3b   :  { %v96_v36 = vld [vmem:[#allocation6 + $0xf8] sm:$0xff]  ;;  %v1102_v39 = vcombine.high %v91_v30, %v95_v31  ;;  %v87_v41 = vld [vmem:[#allocation6 + $0xb0] sm:$0xff]  ;;  %v1264_v27 = vld [vmem:[#allocation8 + $0x48] sm:$0xff]  }
  0x3c   :  { %v84_v42 = vld [vmem:[#allocation6 + $0x98] sm:$0xff]  ;;  %v75_v48 = vld [vmem:[#allocation6 + $0x50] sm:$0xff] }
  0x3d   :  { %464 = vmatpush1.bf16.msra.mxu0 %v1097_v43  ;;  %507 = vmatpush1.bf16.msra.mxu1 %v1099_v44  ;;  %v88_v43 = vld [vmem:[#allocation6 + $0xb8] sm:$0xff]  ;;  %v1101_v44 = vcombine.low %v91_v30, %v95_v31  ;;  %v79_v49 = vld [vmem:[#allocation6 + $0x70] sm:$0xff]  ;;  %v1267_v30 = vld [vmem:[#allocation8 + $0x88] sm:$0xff]  }
  0x3e   :  { %465 = vmatprep.subr.bf16.mxu0 %v1090_v45  ;;  %508 = vmatprep.subr.bf16.mxu1 %v1092_v46  ;;  %v1103_v45 = vcombine.low %v92_v34, %v96_v36  ;;  %v1094_v46 = vcombine.high %v83_v40, %v87_v41  ;;  %v1096_v47 = vcombine.high %v84_v42, %v88_v43  ;;  %v76_v50 = vld [vmem:[#allocation6 + $0x58] sm:$0xff]  ;;  %v67_v56 = vld [vmem:[#allocation6 + $0x10] sm:$0xff]  ;;  %v1268_v31 = vld [vmem:[#allocation8 + $0x40] sm:$0xff]  }
  0x3f   :  { %v1086_v54 = vcombine.high %v75_v48, %v79_v49  ;;  %v68_v58 = vld [vmem:[#allocation6 + $0x18] sm:$0xff]  ;;  %v1085_v60 = vcombine.low %v75_v48, %v79_v49  ;;  %v1246_v10 = vld [vmem:[#allocation8 + $0x30] sm:$0xff]  }
  0x40   :  { %v1242_v5 = vld [vmem:[#allocation8 + $0x38] sm:$0xff]   ;;  %v1247_v11 = vld [vmem:[#allocation8 + $0xb0] sm:$0xff]  }
  0x41   :  { %466 = vmatpush1.bf16.msra.mxu0 %v1089_v51  ;;  %509 = vmatpush1.bf16.msra.mxu1 %v1091_v52  ;;  %v80_v51 = vld [vmem:[#allocation6 + $0x78] sm:$0xff]  ;;  %v1093_v52 = vcombine.low %v83_v40, %v87_v41  ;;  %v1260_v23 = vld [vmem:[#allocation8 + $0x50] sm:$0xff]  }
  0x42   :  { %467 = vmatprep.subr.bf16.mxu0 %v1082_v53  ;;  %510 = vmatprep.subr.bf16.mxu1 %v1084_v57  ;;  %v1095_v53 = vcombine.low %v84_v42, %v88_v43  ;;  %v1088_v55 = vcombine.high %v76_v50, %v80_v51  ;;  %v71_v57 = vld [vmem:[#allocation6 + $0x30] sm:$0xff]  ;;  %v1087_v61 = vcombine.low %v76_v50, %v80_v51  ;;  %v1243_v6 = vld [vmem:[#allocation8 + $0xb8] sm:$0xff]  }
  0x43   :  { %v1077_v1 = vcombine.low %v67_v56, %v71_v57  ;;  %v1256_v19 = vld [vmem:[#allocation8 + $0x58] sm:$0xff]   ;;  %v1263_v26 = vld [vmem:[#allocation8 + $0x90] sm:$0xff]  }
  0x44   :  { %v1259_v22 = vld [vmem:[#allocation8 + $0x98] sm:$0xff]  }
  0x45   :  { %468 = vmatpush1.bf16.msra.mxu0 %v1081_v59  ;;  %511 = vmatpush1.bf16.msra.mxu1 %v1083_v62  ;;  %v72_v59 = vld [vmem:[#allocation6 + $0x38] sm:$0xff]  ;;  %v1078_v62 = vcombine.high %v67_v56, %v71_v57 }
  0x46   :  { %469 = vmatprep.subr.bf16.mxu0 %v1074_v63  ;;  %512 = vmatprep.subr.bf16.mxu1 %v1076_v3  ;;  %v1080_v63 = vcombine.high %v68_v58, %v72_v59  ;;  %v1079_v2 = vcombine.low %v68_v58, %v72_v59  ;;  %v1240_v3 = vld [vmem:[#allocation8 + $0x78] sm:$0xff]  }
  0x49   :  { %470 = vmatpush1.bf16.msra.mxu0 %v1073_v4  ;;  %513 = vmatpush1.bf16.msra.mxu1 %v1075_v7  ;;  %v1241_v4 = vld [vmem:[#allocation8 + $0xf8] sm:$0xff]   ;;  %v1244_v7 = vld [vmem:[#allocation8 + $0x70] sm:$0xff]  }
  0x4a   :  { %541 = vmatprep.subr.bf16.mxu0 %v1134_v9  ;;  %584 = vmatprep.subr.bf16.mxu1 %v1136_v12  ;;  %v1245_v9 = vld [vmem:[#allocation8 + $0xf0] sm:$0xff]   ;;  %v1248_v12 = vld [vmem:[#allocation8 + $0x68] sm:$0xff]  }
  0x4c   :  { %488 = vmatmul.mubr.bf16.vlgmr.msra.gmra.mxu0 %v1436_v8  ;;  %531 = vmatmul.mubr.bf16.vlgmr.msra.gmra.mxu1 %v1436_v8 }
  0x4d   :  { %542 = vmatpush1.bf16.msra.mxu0 %v1133_v13  ;;  %585 = vmatpush1.bf16.msra.mxu1 %v1135_v16  ;;  %v1249_v13 = vld [vmem:[#allocation8 + $0xe8] sm:$0xff]   ;;  %v1253_v16 = vld [vmem:[#allocation8 + $0xe0] sm:$0xff]  }
  0x4e   :  { %543 = vmatprep.subr.bf16.mxu0 %v1126_v17  ;;  %586 = vmatprep.subr.bf16.mxu1 %v1128_v20  ;;  %v1254_v17 = vld [vmem:[#allocation8 + $0x20] sm:$0xff]   ;;  %v1257_v20 = vld [vmem:[#allocation8 + $0xd8] sm:$0xff]  }
  0x4f   :  { %573 = vmatprep.mubr.bf16.mxu0 %v1397_v0  ;;  %616 = vmatprep.mubr.bf16.mxu1 %v1397_v0  ;;  %v1104_v0 = vcombine.high %v92_v34, %v96_v36  ;;  %v1271_v34 = vld [vmem:[#allocation8 + $0x80] sm:$0xff]  }
  0x51   :  { %544 = vmatpush1.bf16.msra.mxu0 %v1125_v21  ;;  %587 = vmatpush1.bf16.msra.mxu1 %v1127_v24  ;;  %v1258_v21 = vld [vmem:[#allocation8 + $0x18] sm:$0xff]   ;;  %v1261_v24 = vld [vmem:[#allocation8 + $0xd0] sm:$0xff]  }
  0x52   :  { %545 = vmatprep.subr.bf16.mxu0 %v1118_v25  ;;  %588 = vmatprep.subr.bf16.mxu1 %v1120_v28  ;;  %v1262_v25 = vld [vmem:[#allocation8 + $0x10] sm:$0xff]   ;;  %v1265_v28 = vld [vmem:[#allocation8 + $0xc8] sm:$0xff]  }
  0x55   :  { %546 = vmatpush1.bf16.msra.mxu0 %v1117_v29  ;;  %589 = vmatpush1.bf16.msra.mxu1 %v1119_v32  ;;  %v1266_v29 = vld [vmem:[#allocation8 + $0x8] sm:$0xff]   ;;  %v1269_v32 = vld [vmem:[#allocation8 + $0xc0] sm:$0xff]  }
  0x56   :  { %547 = vmatprep.subr.bf16.mxu0 %v1110_v33  ;;  %590 = vmatprep.subr.bf16.mxu1 %v1112_v35  ;;  %v1270_v33 = vld [vmem:[#allocation8] sm:$0xff]  }
  0x59   :  { %548 = vmatpush1.bf16.msra.mxu0 %v1109_v37  ;;  %591 = vmatpush1.bf16.msra.mxu1 %v1111_v38 }
  0x5a   :  { %549 = vmatprep.subr.bf16.mxu0 %v1102_v39  ;;  %592 = vmatprep.subr.bf16.mxu1 %v1104_v0 }
  0x5d   :  { %550 = vmatpush1.bf16.msra.mxu0 %v1101_v44  ;;  %593 = vmatpush1.bf16.msra.mxu1 %v1103_v45 }
  0x5e   :  { %551 = vmatprep.subr.bf16.mxu0 %v1094_v46  ;;  %594 = vmatprep.subr.bf16.mxu1 %v1096_v47 }
  0x61   :  { %552 = vmatpush1.bf16.msra.mxu0 %v1093_v52  ;;  %595 = vmatpush1.bf16.msra.mxu1 %v1095_v53 }
  0x62   :  { %553 = vmatprep.subr.bf16.mxu0 %v1086_v54  ;;  %596 = vmatprep.subr.bf16.mxu1 %v1088_v55 }
  0x65   :  { %554 = vmatpush1.bf16.msra.mxu0 %v1085_v60  ;;  %597 = vmatpush1.bf16.msra.mxu1 %v1087_v61 }
  0x66   :  { %555 = vmatprep.subr.bf16.mxu0 %v1078_v62  ;;  %598 = vmatprep.subr.bf16.mxu1 %v1080_v63 }
  0x69   :  { %556 = vmatpush1.bf16.msra.mxu0 %v1077_v1  ;;  %599 = vmatpush1.bf16.msra.mxu1 %v1079_v2 }
  0x6a   :  { %1186 = vmatprep.subr.bf16.mxu0 %v1240_v3  ;;  %1208 = vmatprep.subr.bf16.mxu1 %v1241_v4 }
  0x6c   :  { %574 = vmatmul.mubr.bf16.vlgmr.msra.gmra.mxu0 %v1436_v8  ;;  %617 = vmatmul.mubr.bf16.vlgmr.msra.gmra.mxu1 %v1436_v8  ;;  %v1251_v8 = vld [vmem:[#allocation8 + $0xa8] sm:$0xff]  }
  0x6d   :  { %1187 = vmatpush3.bf16.msra.mxu0 %v1242_v5  ;;  %1209 = vmatpush3.bf16.msra.mxu1 %v1243_v6 }
  0x6e   :  { %1188 = vmatprep.subr.bf16.mxu0 %v1244_v7  ;;  %1210 = vmatprep.subr.bf16.mxu1 %v1245_v9 }
  0x71   :  { %1189 = vmatpush3.bf16.msra.mxu0 %v1246_v10  ;;  %1211 = vmatpush3.bf16.msra.mxu1 %v1247_v11 }
  0x72   :  { %1190 = vmatprep.subr.bf16.mxu0 %v1248_v12  ;;  %1212 = vmatprep.subr.bf16.mxu1 %v1249_v13 }
  0x75   :  { %1191 = vmatpush3.bf16.msra.mxu0 %v1250_v14  ;;  %1213 = vmatpush3.bf16.msra.mxu1 %v1251_v8 }
  0x76   :  { %1192 = vmatprep.subr.bf16.mxu0 %v1252_v15  ;;  %1214 = vmatprep.subr.bf16.mxu1 %v1253_v16 }
  0x79   :  { %1193 = vmatpush3.bf16.msra.mxu0 %v1254_v17  ;;  %1215 = vmatpush3.bf16.msra.mxu1 %v1255_v18 }
  0x7a   :  { %1194 = vmatprep.subr.bf16.mxu0 %v1256_v19  ;;  %1216 = vmatprep.subr.bf16.mxu1 %v1257_v20 }
  0x7d   :  { %1195 = vmatpush3.bf16.msra.mxu0 %v1258_v21  ;;  %1217 = vmatpush3.bf16.msra.mxu1 %v1259_v22 }
  0x7e   :  { %1196 = vmatprep.subr.bf16.mxu0 %v1260_v23  ;;  %1218 = vmatprep.subr.bf16.mxu1 %v1261_v24 }
  0x81   :  { %1197 = vmatpush3.bf16.msra.mxu0 %v1262_v25  ;;  %1219 = vmatpush3.bf16.msra.mxu1 %v1263_v26 }
  0x82   :  { %1198 = vmatprep.subr.bf16.mxu0 %v1264_v27  ;;  %1220 = vmatprep.subr.bf16.mxu1 %v1265_v28 }
  0x85   :  { %1199 = vmatpush3.bf16.msra.mxu0 %v1266_v29  ;;  %1221 = vmatpush3.bf16.msra.mxu1 %v1267_v30 }
  0x86   :  { %1200 = vmatprep.subr.bf16.mxu0 %v1268_v31  ;;  %1222 = vmatprep.subr.bf16.mxu1 %v1269_v32 }
  0x89   :  { %1201 = vmatpush3.bf16.msra.mxu0 %v1270_v33  ;;  %1223 = vmatpush3.bf16.msra.mxu1 %v1271_v34 }
 0x10c   :  { %v1444_v35 = vpop.f32.mrf.mxu0  ;;  %v1447_v37 = vpop.f32.mrf.mxu1 }
 0x10d   :  { %v1137_v36 = vmul.f32 -1.442695, %v1444_v35  ;;  %v1139_v38 = vmul.f32 -1.442695, %v1447_v37 }
 0x10e   :  { %v491_v39 = vpop.f32.mrf.mxu0  ;;  %v534_v40 = vpop.f32.mrf.mxu1 }
 0x10f   :  { %1272 = vpow2.f32 %v1137_v36  ;;  %v1138_v0 = vmul.f32 -1.442695, %v491_v39  ;;  %v1140_v41 = vmul.f32 -1.442695, %v534_v40 }
 0x110   :  { %1274 = vpow2.f32 %v1139_v38  ;;  %v493_v42 = vpop.f32.mrf.mxu0  ;;  %v536_v44 = vpop.f32.mrf.mxu1 }
 0x111   :  { %1276 = vpow2.f32 %v1138_v0  ;;  %v1141_v43 = vmul.f32 -1.442695, %v493_v42  ;;  %v1143_v45 = vmul.f32 -1.442695, %v536_v44 }
 0x112   :  { %1278 = vpow2.f32 %v1140_v41  ;;  %v495_v46 = vpop.f32.mrf.mxu0  ;;  %v538_v48 = vpop.f32.mrf.mxu1 }
 0x113   :  { %1280 = vpow2.f32 %v1141_v43  ;;  %v1142_v47 = vmul.f32 -1.442695, %v495_v46  ;;  %v1144_v49 = vmul.f32 -1.442695, %v538_v48 }
 0x114   :  { %1282 = vpow2.f32 %v1143_v45 }
 0x115   :  { %1284 = vpow2.f32 %v1142_v47 }
 0x116   :  { %1286 = vpow2.f32 %v1144_v49 }
 0x11c   :  { %v1273_v50 = vpop.eup %1272 }
 0x11d   :  { %v1275_v51 = vpop.eup %1274  ;;  %v651_v52 = vadd.f32 1.0, %v1273_v50 }
 0x11e   :  { %v1277_v53 = vpop.eup %1276  ;;  %v653_v54 = vadd.f32 1.0, %v1275_v51 }
 0x11f   :  { %v1279_v55 = vpop.eup %1278  ;;  %1288 = vrcp.f32 %v651_v52  ;;  %v652_v56 = vadd.f32 1.0, %v1277_v53 }
 0x120   :  { %v1281_v57 = vpop.eup %1280  ;;  %1290 = vrcp.f32 %v653_v54  ;;  %v654_v58 = vadd.f32 1.0, %v1279_v55 }
 0x121   :  { %v1283_v59 = vpop.eup %1282  ;;  %1292 = vrcp.f32 %v652_v56  ;;  %v655_v60 = vadd.f32 1.0, %v1281_v57 }
 0x122   :  { %v1285_v61 = vpop.eup %1284  ;;  %1294 = vrcp.f32 %v654_v58  ;;  %v657_v62 = vadd.f32 1.0, %v1283_v59 }
 0x123   :  { %v1287_v63 = vpop.eup %1286  ;;  %1296 = vrcp.f32 %v655_v60  ;;  %v656_v1 = vadd.f32 1.0, %v1285_v61 }
 0x124   :  { %1298 = vrcp.f32 %v657_v62  ;;  %v658_v2 = vadd.f32 1.0, %v1287_v63 }
 0x125   :  { %1300 = vrcp.f32 %v656_v1 }
 0x126   :  { %1302 = vrcp.f32 %v658_v2 }
 0x12c   :  { %v1289_v3 = vpop.eup %1288  ;;  %v575_v4 = vpop.f32.mrf.mxu0 }
 0x12d   :  { %v1291_v5 = vpop.eup %1290  ;;  %v618_v6 = vpop.f32.mrf.mxu1  ;;  %v675_v18 = vmul.f32 %v1289_v3, %v1444_v35 }
 0x12e   :  { %v1293_v7 = vpop.eup %1292  ;;  %v577_v9 = vpop.f32.mrf.mxu0  ;;  %v677_v22 = vmul.f32 %v1291_v5, %v1447_v37 }
 0x12f   :  { %v1295_v10 = vpop.eup %1294  ;;  %v620_v11 = vpop.f32.mrf.mxu1  ;;  %v676_v8 = vmul.f32 %v1293_v7, %v491_v39  ;;  %v683_v31 = vmul.f32 %v675_v18, %v575_v4 }
 0x130   :  { %v1297_v12 = vpop.eup %1296  ;;  %v579_v13 = vpop.f32.mrf.mxu0  ;;  %v678_v19 = vmul.f32 %v1295_v10, %v534_v40  ;;  %v685_v34 = vmul.f32 %v677_v22, %v618_v6 }
 0x131   :  { %v1299_v14 = vpop.eup %1298  ;;  %v679_v15 = vmul.f32 %v1297_v12, %v493_v42  ;;  %v622_v16 = vpop.f32.mrf.mxu1  ;;  %v684_v27 = vmul.f32 %v676_v8, %v577_v9 }
 0x132   :  { %v1301_v17 = vpop.eup %1300  ;;  %v681_v20 = vmul.f32 %v1299_v14, %v536_v44  ;;  %v581_v26 = vpop.f32.mrf.mxu0  ;;  %v686_v32 = vmul.f32 %v678_v19, %v620_v11 }
 0x133   :  { %v1303_v21 = vpop.eup %1302  ;;  %v680_v23 = vmul.f32 %v1301_v17, %v495_v46  ;;  %v687_v25 = vmul.f32 %v679_v15, %v579_v13  ;;  %v624_v30 = vpop.f32.mrf.mxu1 }
 0x134   :  { %v682_v24 = vmul.f32 %v1303_v21, %v538_v48  ;;  %v689_v28 = vmul.f32 %v681_v20, %v622_v16 }
 0x135   :  { %v688_v29 = vmul.f32 %v680_v23, %v581_v26  ;;  %v693_v38 = vpack.c.bf16 %v687_v25, %v683_v31 }
 0x136   :  { %v690_v33 = vmul.f32 %v682_v24, %v624_v30  ;;  %v695_v39 = vpack.c.bf16 %v689_v28, %v685_v34 }
 0x137   :  { %v694_v36 = vpack.c.bf16 %v688_v29, %v684_v27 }
 0x138   :  { %v696_v35 = vpack.c.bf16 %v690_v33, %v686_v32 }
 0x139   :  { %985 = vmatprep.mubr.bf16.mxu0 %v694_v36 }
 0x13a   :  { %1026 = vmatprep.mubr.bf16.mxu1 %v696_v35  ;;  %986 = vmatmul.mubr.bf16.vlgmr.msra.gmra.mxu0 %v693_v38 }
 0x13b   :  { %1027 = vmatmul.mubr.bf16.vlgmr.msra.gmra.mxu1 %v695_v39 }
 0x1fa   :  { %v1202_v37 = vpop.f32.mrf.mxu0 }
 0x1fb   :  { %v1224_v0 = vpop.f32.mrf.mxu1 }
 0x1fc   :  { %v1203_v40 = vpop.f32.mrf.mxu0 }
 0x1fd   :  { %v1225_v41 = vpop.f32.mrf.mxu1  ;;  %v1204_v44 = vadd.f32 %v1203_v40, %v1202_v37 }
 0x1fe   :  { %v1205_v42 = vpop.f32.mrf.mxu0  ;;  %v1226_v45 = vadd.f32 %v1225_v41, %v1224_v0 }
 0x1ff   :  { %v1227_v43 = vpop.f32.mrf.mxu1 }
 0x200   :  { %v1206_v46 = vpop.f32.mrf.mxu0  ;;  %v1029_v50 = vadd.f32 %v1226_v45, %v1204_v44 }
 0x201   :  { %v1207_v47 = vadd.f32 %v1206_v46, %v1205_v42  ;;  %v1228_v48 = vpop.f32.mrf.mxu1 }
 0x202   :  { %v1229_v49 = vadd.f32 %v1228_v48, %v1227_v43 }
 0x204   :  { %v1032_v51 = vadd.f32 %v1229_v49, %v1207_v47 }
 0x206   :  { %v1184_v52 = vpack.c.bf16 %v1032_v51, %v1029_v50 }
 0x208   :  { %1185 = vst [vmem:[#allocation9] sm:$0xff] %v1184_v52  }
 0x209   :  { %1375 = shalt.err (!%p1372_p5)
}
 0x20a   :  { %1065 = dma.vmem_to_hbm [thread:$0]  %s1060_s2, 128, %s1461_s3, [#allocation5], %s1394_s22, %s1394_s22, %s1395_s23  }
 0x20b   :  { %1388 = dma.done.wait [#allocation5], 128  }
 0x20c   :  { %1389 = vsyncadd [#allocation5], 4294967168 }
 0x20d   :  { %1069 = vsyncpa [#allocation4], 1 }
 0x20e   :  { %1070 = vsyncpa [#allocation7], 1 }
 0x20f   :  { %1071 = vsyncpa [#allocation5], 1 }

</bundles_post_ra>
